<compile_context>
chip_gen: v7x
topology: tpu7x:2x2x1
jax: 0.10.0
libtpu: 0.0.40
codegen_flags: <defaults>
</compile_context>

<pallas_src>
import functools

import jax
import jax.numpy as jnp
from jax.experimental import pallas as pl
from jax.experimental.pallas import tpu as pltpu

TRIMAP_UNKNOWN = 128.0 / 255.0
LANES = 128
TR_TARGET = 1024  # rows (of 128 lanes) per tile; ~4.7 MiB/step of f32 inputs


def _loss_kernel(p_ref, gt_ref, tri_ref, fg_ref, bg_ref, out_ref,
                 sqr_acc, w_acc, comp_acc, *, unknown):
    b = pl.program_id(1)

    @pl.when(b == 0)
    def _init():
        sqr_acc[...] = jnp.zeros_like(sqr_acc)
        w_acc[...] = jnp.zeros_like(w_acc)
        comp_acc[...] = jnp.zeros_like(comp_acc)

    p = p_ref[0].astype(jnp.float32)          # (TR, 128)
    gt = gt_ref[0].astype(jnp.float32)        # (TR, 128)
    d = gt - p
    d2 = d * d
    # weight: 1.0 where trimap == unknown (compare in the trimap's own dtype)
    w = (tri_ref[0] == unknown).astype(jnp.float32)

    # sum_c (fg_c - bg_c)^2  (3 channels, statically unrolled)
    fb = fg_ref[0, 0].astype(jnp.float32) - bg_ref[0, 0].astype(jnp.float32)
    fb2 = fb * fb
    for c in range(1, 3):
        fb = fg_ref[0, c].astype(jnp.float32) - bg_ref[0, c].astype(jnp.float32)
        fb2 = fb2 + fb * fb

    # per-pixel accumulators over the batch
    sqr_acc[...] += d2
    w_acc[...] += w
    # comp term: (gt_comp - p_comp)^2 summed over channels == d^2 * fb2
    comp_acc[...] += d2 * fb2 * w

    @pl.when(b == pl.num_programs(1) - 1)
    def _finalize():
        alpha_part = jnp.sum(sqr_acc[...] * w_acc[...])   # scalar
        comp_part = jnp.sum(comp_acc[...])                # scalar
        row = jax.lax.broadcasted_iota(jnp.int32, (1, 2, LANES), 1)
        out_ref[...] = jnp.where(row == 0, alpha_part, comp_part)


def alpha_comp_loss_u(p_mask, gt_mask, fg, bg, trimap, eps=1e-6):
    """Forward pass of AlphaCompLoss_u. Returns a scalar float32."""
    B = p_mask.shape[0]
    H, W = p_mask.shape[-2], p_mask.shape[-1]
    N = H * W

    # ---- lane-dense layout: flatten HxW -> R x 128 rows, row-tile with TR ----
    R = -(-N // LANES)
    if R <= TR_TARGET:
        TR = R
        num_tiles = 1
    else:
        num_tiles = -(-R // TR_TARGET)
        TR = -(-R // num_tiles)
        TR = -(-TR // 8) * 8            # sublane-aligned tile rows
    R_pad = TR * num_tiles
    N_pad = R_pad * LANES

    p2 = p_mask.reshape(B, N)
    gt2 = gt_mask.reshape(B, N)
    tri2 = trimap.reshape(B, N)
    fg2 = fg.reshape(B, 3, N)
    bg2 = bg.reshape(B, 3, N)
    if N_pad != N:
        pad = N_pad - N
        p2 = jnp.pad(p2, ((0, 0), (0, pad)))
        gt2 = jnp.pad(gt2, ((0, 0), (0, pad)))
        tri2 = jnp.pad(tri2, ((0, 0), (0, pad)))   # pad value 0 != unknown; d=0 there anyway
        fg2 = jnp.pad(fg2, ((0, 0), (0, 0), (0, pad)))
        bg2 = jnp.pad(bg2, ((0, 0), (0, 0), (0, pad)))
    p3 = p2.reshape(B, R_pad, LANES)
    gt3 = gt2.reshape(B, R_pad, LANES)
    tri3 = tri2.reshape(B, R_pad, LANES)
    fg3 = fg2.reshape(B, 3, R_pad, LANES)
    bg3 = bg2.reshape(B, 3, R_pad, LANES)

    # unknown-region constant in the trimap's own domain (int trimap: 128)
    if jnp.issubdtype(trimap.dtype, jnp.integer):
        unknown = 128
    else:
        unknown = TRIMAP_UNKNOWN

    kernel = functools.partial(_loss_kernel, unknown=unknown)

    partials = pl.pallas_call(
        kernel,
        out_shape=jax.ShapeDtypeStruct((num_tiles, 2, LANES), jnp.float32),
        grid_spec=pltpu.PrefetchScalarGridSpec(
            num_scalar_prefetch=0,
            grid=(num_tiles, B),              # batch (reduction) innermost
            in_specs=[
                pl.BlockSpec((1, TR, LANES), lambda t, b: (b, t, 0)),
                pl.BlockSpec((1, TR, LANES), lambda t, b: (b, t, 0)),
                pl.BlockSpec((1, TR, LANES), lambda t, b: (b, t, 0)),
                pl.BlockSpec((1, 3, TR, LANES), lambda t, b: (b, 0, t, 0)),
                pl.BlockSpec((1, 3, TR, LANES), lambda t, b: (b, 0, t, 0)),
            ],
            out_specs=pl.BlockSpec((1, 2, LANES), lambda t, b: (t, 0, 0)),
            scratch_shapes=[
                pltpu.VMEM((TR, LANES), jnp.float32),   # sum_b (gt-p)^2
                pltpu.VMEM((TR, LANES), jnp.float32),   # sum_b w
                pltpu.VMEM((TR, LANES), jnp.float32),   # sum_b d^2*|fg-bg|^2*w
            ],
        ),
        compiler_params=pltpu.CompilerParams(
            dimension_semantics=("parallel", "arbitrary")),
    )(p3, gt3, tri3, fg3, bg3)

    # final reduction + sqrt/mean/mix in the wrapper (tiny)
    alpha_sum = jnp.sum(partials[:, 0, 0])
    comp_sum = jnp.sum(partials[:, 1, 0])
    inv_b = jnp.float32(1.0 / B)
    alpha_l = jnp.sqrt(alpha_sum * inv_b + jnp.float32(eps))
    comp_l = jnp.sqrt(comp_sum * inv_b + jnp.float32(eps))
    return 0.5 * alpha_l + 0.5 * comp_l


def _reference(p_mask, gt_mask, fg, bg, trimap, eps=1e-6):
    """Plain-JAX mirror of the torch code (same broadcasting / reductions)."""
    p_mask = p_mask.astype(jnp.float32)
    gt_mask = gt_mask.astype(jnp.float32)
    fg = fg.astype(jnp.float32)
    bg = bg.astype(jnp.float32)
    # alpha_loss_u: (B,1,H,W) * (B,H,W) -> (B,B,H,W) torch-style broadcast
    sqr_diff = (gt_mask - p_mask) ** 2
    w = (trimap == TRIMAP_UNKNOWN).astype(jnp.float32)
    loss_a = sqr_diff * w
    image_loss_a = loss_a.sum(axis=1).sum(axis=1).sum(axis=1)
    alpha_l = jnp.sqrt(image_loss_a.mean() + eps)
    # comp_loss_u
    gt_comp = gt_mask * fg + (1.0 - gt_mask) * bg
    p_comp = p_mask * fg + (1.0 - p_mask) * bg
    s_diff = (gt_comp - p_comp) ** 2
    w3 = jnp.concatenate([w[:, None]] * 3, axis=1)
    loss_c = s_diff * w3
    image_loss_c = loss_c.sum(axis=1).sum(axis=1).sum(axis=1)
    comp_l = jnp.sqrt(image_loss_c.mean() + eps)
    return 0.5 * alpha_l + 0.5 * comp_l


if __name__ == "__main__":
    B, H, W = 2, 16, 16
    key = jax.random.PRNGKey(0)
    k1, k2, k3, k4, k5 = jax.random.split(key, 5)
    p_mask = jax.random.uniform(k1, (B, 1, H, W), dtype=jnp.float32)
    gt_mask = jax.random.uniform(k2, (B, 1, H, W), dtype=jnp.float32)
    fg = jax.random.uniform(k3, (B, 3, H, W), dtype=jnp.float32)
    bg = jax.random.uniform(k4, (B, 3, H, W), dtype=jnp.float32)
    cat = jax.random.randint(k5, (B, H, W), 0, 3)
    trimap = jnp.where(cat == 1, jnp.float32(TRIMAP_UNKNOWN),
                       jnp.where(cat == 0, jnp.float32(0.0), jnp.float32(1.0)))

    out = jax.block_until_ready(alpha_comp_loss_u(p_mask, gt_mask, fg, bg, trimap))
    ref = jax.block_until_ready(_reference(p_mask, gt_mask, fg, bg, trimap))
    assert jnp.allclose(out, ref, rtol=1e-4, atol=1e-5), (out, ref)
    print("KERNEL_OK")
</pallas_src>

<mosaic_0001>
module attributes {stable_mosaic.version = 11 : i64} {
  func.func @_loss_kernel(%arg0: i32, %arg1: i32, %arg2: memref<1x2x128xf32, #tpu.memory_space<vmem>>, %arg3: memref<1x2x128xf32, #tpu.memory_space<vmem>>, %arg4: memref<1x2x128xf32, #tpu.memory_space<vmem>>, %arg5: memref<1x3x2x128xf32, #tpu.memory_space<vmem>>, %arg6: memref<1x3x2x128xf32, #tpu.memory_space<vmem>>, %arg7: memref<1x2x128xf32, #tpu.memory_space<vmem>>, %arg8: memref<2x128xf32, #tpu.memory_space<vmem>>, %arg9: memref<2x128xf32, #tpu.memory_space<vmem>>, %arg10: memref<2x128xf32, #tpu.memory_space<vmem>>) attributes {dimension_semantics = [#tpu.dimension_semantics<parallel>, #tpu.dimension_semantics<arbitrary>], iteration_bounds = array<i64: 1, 2>, scalar_prefetch = 0 : i64, scratch_operands = 3 : i64, tpu.core_type = #tpu.core_type<tc>, window_params = [{transform_indices = @transform_0, window_bounds = array<i64: 1, 2, 128>}, {transform_indices = @transform_1, window_bounds = array<i64: 1, 2, 128>}, {transform_indices = @transform_2, window_bounds = array<i64: 1, 2, 128>}, {transform_indices = @transform_3, window_bounds = array<i64: 1, 3, 2, 128>}, {transform_indices = @transform_4, window_bounds = array<i64: 1, 3, 2, 128>}, {transform_indices = @transform_5, window_bounds = array<i64: 1, 2, 128>}]} {
    %c0_i32 = arith.constant 0 : i32
    %0 = arith.cmpi eq, %arg1, %c0_i32 : i32
    %1 = arith.extui %0 : i1 to i32
    %c0_i32_0 = arith.constant 0 : i32
    %2 = arith.cmpi ne, %1, %c0_i32_0 : i32
    scf.if %2 {
      %cst_44 = arith.constant 0.000000e+00 : f32
      %49 = vector.broadcast %cst_44 : f32 to vector<2x128xf32>
      %c0_45 = arith.constant 0 : index
      %c0_46 = arith.constant 0 : index
      %50 = vector.load %arg8[%c0_45, %c0_46] : memref<2x128xf32, #tpu.memory_space<vmem>>, vector<2x128xf32>
      tpu.vector_store %arg8[%c0_45, %c0_46], %49 {strides = array<i32>} : memref<2x128xf32, #tpu.memory_space<vmem>>, vector<2x128xf32>,
      %cst_47 = arith.constant 0.000000e+00 : f32
      %51 = vector.broadcast %cst_47 : f32 to vector<2x128xf32>
      %c0_48 = arith.constant 0 : index
      %c0_49 = arith.constant 0 : index
      %52 = vector.load %arg9[%c0_48, %c0_49] : memref<2x128xf32, #tpu.memory_space<vmem>>, vector<2x128xf32>
      tpu.vector_store %arg9[%c0_48, %c0_49], %51 {strides = array<i32>} : memref<2x128xf32, #tpu.memory_space<vmem>>, vector<2x128xf32>,
      %cst_50 = arith.constant 0.000000e+00 : f32
      %53 = vector.broadcast %cst_50 : f32 to vector<2x128xf32>
      %c0_51 = arith.constant 0 : index
      %c0_52 = arith.constant 0 : index
      %54 = vector.load %arg10[%c0_51, %c0_52] : memref<2x128xf32, #tpu.memory_space<vmem>>, vector<2x128xf32>
      tpu.vector_store %arg10[%c0_51, %c0_52], %53 {strides = array<i32>} : memref<2x128xf32, #tpu.memory_space<vmem>>, vector<2x128xf32>,
    } else {
    }
    %c0 = arith.constant 0 : index
    %c0_1 = arith.constant 0 : index
    %c0_2 = arith.constant 0 : index
    %3 = vector.load %arg2[%c0, %c0_1, %c0_2] : memref<1x2x128xf32, #tpu.memory_space<vmem>>, vector<1x2x128xf32>
    %4 = vector.shape_cast %3 : vector<1x2x128xf32> to vector<2x128xf32>
    %c0_3 = arith.constant 0 : index
    %c0_4 = arith.constant 0 : index
    %c0_5 = arith.constant 0 : index
    %5 = vector.load %arg3[%c0_3, %c0_4, %c0_5] : memref<1x2x128xf32, #tpu.memory_space<vmem>>, vector<1x2x128xf32>
    %6 = vector.shape_cast %5 : vector<1x2x128xf32> to vector<2x128xf32>
    %7 = arith.subf %6, %4 : vector<2x128xf32>
    %8 = arith.mulf %7, %7 : vector<2x128xf32>
    %c0_6 = arith.constant 0 : index
    %c0_7 = arith.constant 0 : index
    %c0_8 = arith.constant 0 : index
    %9 = vector.load %arg4[%c0_6, %c0_7, %c0_8] : memref<1x2x128xf32, #tpu.memory_space<vmem>>, vector<1x2x128xf32>
    %10 = vector.shape_cast %9 : vector<1x2x128xf32> to vector<2x128xf32>
    %cst = arith.constant 0.501960814 : f32
    %11 = vector.broadcast %cst : f32 to vector<2x128xf32>
    %12 = arith.cmpf oeq, %10, %11 : vector<2x128xf32>
    %13 = arith.extui %12 : vector<2x128xi1> to vector<2x128xi32>
    %14 = arith.sitofp %13 : vector<2x128xi32> to vector<2x128xf32>
    %c0_9 = arith.constant 0 : index
    %c0_10 = arith.constant 0 : index
    %c0_11 = arith.constant 0 : index
    %c0_12 = arith.constant 0 : index
    %15 = vector.load %arg5[%c0_9, %c0_10, %c0_11, %c0_12] : memref<1x3x2x128xf32, #tpu.memory_space<vmem>>, vector<1x1x2x128xf32>
    %16 = vector.shape_cast %15 : vector<1x1x2x128xf32> to vector<2x128xf32>
    %c0_13 = arith.constant 0 : index
    %c0_14 = arith.constant 0 : index
    %c0_15 = arith.constant 0 : index
    %c0_16 = arith.constant 0 : index
    %17 = vector.load %arg6[%c0_13, %c0_14, %c0_15, %c0_16] : memref<1x3x2x128xf32, #tpu.memory_space<vmem>>, vector<1x1x2x128xf32>
    %18 = vector.shape_cast %17 : vector<1x1x2x128xf32> to vector<2x128xf32>
    %19 = arith.subf %16, %18 : vector<2x128xf32>
    %20 = arith.mulf %19, %19 : vector<2x128xf32>
    %c0_17 = arith.constant 0 : index
    %c1 = arith.constant 1 : index
    %c0_18 = arith.constant 0 : index
    %c0_19 = arith.constant 0 : index
    %21 = vector.load %arg5[%c0_17, %c1, %c0_18, %c0_19] : memref<1x3x2x128xf32, #tpu.memory_space<vmem>>, vector<1x1x2x128xf32>
    %22 = vector.shape_cast %21 : vector<1x1x2x128xf32> to vector<2x128xf32>
    %c0_20 = arith.constant 0 : index
    %c1_21 = arith.constant 1 : index
    %c0_22 = arith.constant 0 : index
    %c0_23 = arith.constant 0 : index
    %23 = vector.load %arg6[%c0_20, %c1_21, %c0_22, %c0_23] : memref<1x3x2x128xf32, #tpu.memory_space<vmem>>, vector<1x1x2x128xf32>
    %24 = vector.shape_cast %23 : vector<1x1x2x128xf32> to vector<2x128xf32>
    %25 = arith.subf %22, %24 : vector<2x128xf32>
    %26 = arith.mulf %25, %25 : vector<2x128xf32>
    %27 = arith.addf %20, %26 : vector<2x128xf32>
    %c0_24 = arith.constant 0 : index
    %c2 = arith.constant 2 : index
    %c0_25 = arith.constant 0 : index
    %c0_26 = arith.constant 0 : index
    %28 = vector.load %arg5[%c0_24, %c2, %c0_25, %c0_26] : memref<1x3x2x128xf32, #tpu.memory_space<vmem>>, vector<1x1x2x128xf32>
    %29 = vector.shape_cast %28 : vector<1x1x2x128xf32> to vector<2x128xf32>
    %c0_27 = arith.constant 0 : index
    %c2_28 = arith.constant 2 : index
    %c0_29 = arith.constant 0 : index
    %c0_30 = arith.constant 0 : index
    %30 = vector.load %arg6[%c0_27, %c2_28, %c0_29, %c0_30] : memref<1x3x2x128xf32, #tpu.memory_space<vmem>>, vector<1x1x2x128xf32>
    %31 = vector.shape_cast %30 : vector<1x1x2x128xf32> to vector<2x128xf32>
    %32 = arith.subf %29, %31 : vector<2x128xf32>
    %33 = arith.mulf %32, %32 : vector<2x128xf32>
    %34 = arith.addf %27, %33 : vector<2x128xf32>
    %c0_31 = arith.constant 0 : index
    %c0_32 = arith.constant 0 : index
    %35 = vector.load %arg8[%c0_31, %c0_32] : memref<2x128xf32, #tpu.memory_space<vmem>>, vector<2x128xf32>
    %36 = arith.addf %35, %8 : vector<2x128xf32>
    %c0_33 = arith.constant 0 : index
    %c0_34 = arith.constant 0 : index
    %37 = vector.load %arg8[%c0_33, %c0_34] : memref<2x128xf32, #tpu.memory_space<vmem>>, vector<2x128xf32>
    tpu.vector_store %arg8[%c0_33, %c0_34], %36 {strides = array<i32>} : memref<2x128xf32, #tpu.memory_space<vmem>>, vector<2x128xf32>,
    %c0_35 = arith.constant 0 : index
    %c0_36 = arith.constant 0 : index
    %38 = vector.load %arg9[%c0_35, %c0_36] : memref<2x128xf32, #tpu.memory_space<vmem>>, vector<2x128xf32>
    %39 = arith.addf %38, %14 : vector<2x128xf32>
    %c0_37 = arith.constant 0 : index
    %c0_38 = arith.constant 0 : index
    %40 = vector.load %arg9[%c0_37, %c0_38] : memref<2x128xf32, #tpu.memory_space<vmem>>, vector<2x128xf32>
    tpu.vector_store %arg9[%c0_37, %c0_38], %39 {strides = array<i32>} : memref<2x128xf32, #tpu.memory_space<vmem>>, vector<2x128xf32>,
    %c0_39 = arith.constant 0 : index
    %c0_40 = arith.constant 0 : index
    %41 = vector.load %arg10[%c0_39, %c0_40] : memref<2x128xf32, #tpu.memory_space<vmem>>, vector<2x128xf32>
    %42 = arith.mulf %8, %34 : vector<2x128xf32>
    %43 = arith.mulf %42, %14 : vector<2x128xf32>
    %44 = arith.addf %41, %43 : vector<2x128xf32>
    %c0_41 = arith.constant 0 : index
    %c0_42 = arith.constant 0 : index
    %45 = vector.load %arg10[%c0_41, %c0_42] : memref<2x128xf32, #tpu.memory_space<vmem>>, vector<2x128xf32>
    tpu.vector_store %arg10[%c0_41, %c0_42], %44 {strides = array<i32>} : memref<2x128xf32, #tpu.memory_space<vmem>>, vector<2x128xf32>,
    %c1_i32 = arith.constant 1 : i32
    %46 = arith.cmpi eq, %arg1, %c1_i32 : i32
    %47 = arith.extui %46 : i1 to i32
    %c0_i32_43 = arith.constant 0 : i32
    %48 = arith.cmpi ne, %47, %c0_i32_43 : i32
    scf.if %48 {
      %c0_44 = arith.constant 0 : index
      %c0_45 = arith.constant 0 : index
      %49 = vector.load %arg8[%c0_44, %c0_45] : memref<2x128xf32, #tpu.memory_space<vmem>>, vector<2x128xf32>
      %c0_46 = arith.constant 0 : index
      %c0_47 = arith.constant 0 : index
      %50 = vector.load %arg9[%c0_46, %c0_47] : memref<2x128xf32, #tpu.memory_space<vmem>>, vector<2x128xf32>
      %51 = arith.mulf %49, %50 : vector<2x128xf32>
      %52 = vector.shape_cast %51 : vector<2x128xf32> to vector<1x2x128xf32>
      %cst_48 = arith.constant dense<0.000000e+00> : vector<1xf32>
      %53 = vector.multi_reduction <add>, %52, %cst_48 [1, 2] : vector<1x2x128xf32> to vector<1xf32>
      %54 = vector.shape_cast %53 : vector<1xf32> to vector<1x1x1xf32>
      %55 = vector.extract %54[0, 0, 0] : f32 from vector<1x1x1xf32>
      %c0_49 = arith.constant 0 : index
      %c0_50 = arith.constant 0 : index
      %56 = vector.load %arg10[%c0_49, %c0_50] : memref<2x128xf32, #tpu.memory_space<vmem>>, vector<2x128xf32>
      %57 = vector.shape_cast %56 : vector<2x128xf32> to vector<1x2x128xf32>
      %cst_51 = arith.constant dense<0.000000e+00> : vector<1xf32>
      %58 = vector.multi_reduction <add>, %57, %cst_51 [1, 2] : vector<1x2x128xf32> to vector<1xf32>
      %59 = vector.shape_cast %58 : vector<1xf32> to vector<1x1x1xf32>
      %60 = vector.extract %59[0, 0, 0] : f32 from vector<1x1x1xf32>
      %61 = tpu.iota {dimensions = array<i32: 1>} : vector<1x2x128xi32>
      %c0_i32_52 = arith.constant 0 : i32
      %62 = vector.broadcast %c0_i32_52 : i32 to vector<1x2x128xi32>
      %63 = arith.cmpi eq, %61, %62 : vector<1x2x128xi32>
      %64 = vector.broadcast %55 : f32 to vector<1x2x128xf32>
      %65 = vector.broadcast %60 : f32 to vector<1x2x128xf32>
      %66 = arith.select %63, %64, %65 : vector<1x2x128xi1>, vector<1x2x128xf32>
      %c0_53 = arith.constant 0 : index
      %c0_54 = arith.constant 0 : index
      %c0_55 = arith.constant 0 : index
      %67 = vector.load %arg7[%c0_53, %c0_54, %c0_55] : memref<1x2x128xf32, #tpu.memory_space<vmem>>, vector<1x2x128xf32>
      tpu.vector_store %arg7[%c0_53, %c0_54, %c0_55], %66 {strides = array<i32>} : memref<1x2x128xf32, #tpu.memory_space<vmem>>, vector<1x2x128xf32>,
    } else {
    }
    return
  }
  func.func @transform_0(%arg0: i32, %arg1: i32) -> (i32, i32, i32) {
    %c0_i32 = arith.constant 0 : i32
    %c0_i32_0 = arith.constant 0 : i32
    return %arg1, %arg0, %c0_i32 : i32, i32, i32
  }
  func.func @transform_1(%arg0: i32, %arg1: i32) -> (i32, i32, i32) {
    %c0_i32 = arith.constant 0 : i32
    %c0_i32_0 = arith.constant 0 : i32
    return %arg1, %arg0, %c0_i32 : i32, i32, i32
  }
  func.func @transform_2(%arg0: i32, %arg1: i32) -> (i32, i32, i32) {
    %c0_i32 = arith.constant 0 : i32
    %c0_i32_0 = arith.constant 0 : i32
    return %arg1, %arg0, %c0_i32 : i32, i32, i32
  }
  func.func @transform_3(%arg0: i32, %arg1: i32) -> (i32, i32, i32, i32) {
    %c0_i32 = arith.constant 0 : i32
    %c0_i32_0 = arith.constant 0 : i32
    %c0_i32_1 = arith.constant 0 : i32
    return %arg1, %c0_i32, %arg0, %c0_i32_0 : i32, i32, i32, i32
  }
  func.func @transform_4(%arg0: i32, %arg1: i32) -> (i32, i32, i32, i32) {
    %c0_i32 = arith.constant 0 : i32
    %c0_i32_0 = arith.constant 0 : i32
    %c0_i32_1 = arith.constant 0 : i32
    return %arg1, %c0_i32, %arg0, %c0_i32_0 : i32, i32, i32, i32
  }
  func.func @transform_5(%arg0: i32, %arg1: i32) -> (i32, i32, i32) {
    %c0_i32 = arith.constant 0 : i32
    %c0_i32_0 = arith.constant 0 : i32
    %c0_i32_1 = arith.constant 0 : i32
    return %arg0, %c0_i32, %c0_i32_0 : i32, i32, i32
  }
}

</mosaic_0001>

<bundles_post_ra>
// kernel: tpu_custom_call.1
= control target key start
LH: loop header
LB: loop body
LE: loop exit
PB: predicated region body
PF: predicated region fallthrough
CT: control target
= control target key end

     0   :  { %s1270_s0 = inlined_call_operand.hbm [shape: f32[2,2,128], index: 0, kind: input, shape index: {}]   ;;  %s1271_s1 = inlined_call_operand.hbm [shape: f32[2,2,128], index: 1, kind: input, shape index: {}]   ;;  %s1272_s2 = inlined_call_operand.hbm [shape: f32[2,2,128], index: 2, kind: input, shape index: {}]   ;;  %s1273_s3 = inlined_call_operand.hbm [shape: f32[2,3,2,128], index: 3, kind: input, shape index: {}]   ;;  %s1274_s4 = inlined_call_operand.vmem [shape: f32[2,3,2,128], index: 4, kind: input, shape index: {}]   ;;  %s1275_s5 = inlined_call_operand.hbm [shape: f32[1,2,128], index: 5, kind: output, shape index: {}]  }
   0x1   :  { %1280 = sst [smem:[#allocation20_spill]] %s1271_s1 }
   0x2   :  { %10 = vsyncpa [#allocation6], 0 }
   0x3   :  { %12 = vsyncpa [#allocation6 + $0x1], 0 }
   0x4   :  { %13 = vsyncpa [#allocation9], 0 }
   0x5   :  { %15 = vsyncpa [#allocation9 + $0x1], 0 }
   0x6   :  { %16 = vsyncpa [#allocation12], 0 }
   0x7   :  { %18 = vsyncpa [#allocation12 + $0x1], 0 }
   0x8   :  { %19 = vsyncpa [#allocation7], 0  ;;  %s1002_s18 = smov 0   ;;  %s1004_s19 = smov 0  }
   0x9   :  { %s1006_s20 = smov 0   ;;  %s1008_s21 = smov 0  }
   0xa   :  { %s1010_s22 = smov 0   ;;  %s1012_s23 = smov 0  }
   0xb LB: > { %s1031_s24 = sadd.s32 4294967295, %s961_s23   ;;  %s34_s25 = sadd.s32 1, %s957_s22  ;;  %s961_s23 = sphi %s1012_s23, %s25_s23   ;;  %s957_s22 = sphi %s1010_s22, %s1299_s22   ;;  %s953_s21 = sphi %s1008_s21, %s1298_s21   ;;  %s949_s20 = sphi %s1006_s20, %s1297_s20   ;;  %s945_s19 = sphi %s1004_s19, %s1296_s19   ;;  %s941_s18 = sphi %s1002_s18, %s1295_s18  }
   0xc   : > { %p35_p0 = scmp.ge.s32.totalorder %s34_s25, 2  ;;  %s46_s26 = sadd.s32 1, %s949_s20 }
   0xd   : > { %p53_p1 = scmp.ne.s32.totalorder %s949_s20, %s945_s19  ;;  %p54_p2 = scmp.eq.s32.totalorder %s961_s23, 0 }
   0xe   : > { %s1301_s25 = smov (%p35_p0, %s34_s25), 0  ;;  %p59_p4 = scmp.ne.s32.totalorder %s945_s19, %s941_s18 }
   0xf   : > { %1281 = sst [smem:[#allocation18_spill]] %s1301_s25  ;;  %p55_p3 = por %p54_p2, %p53_p1 }
  0x10   : > { %s41_s27 = ssub.s32 %s957_s22, %s1301_s25  ;;  %p60_p5 = scmp.eq.s32.totalorder %s1031_s24, 0 }
  0x11   : > { %p44_p6 = scmp.eq.s32.totalorder %s41_s27, 0  ;;  %p697_p8 = scmp.lt.s32.totalorder %s961_s23, 2 }
  0x12   : > { %p1044_p7 = por %p60_p5, %p59_p4  ;;  %s1053_s30 = sand.u32 1, %s949_s20  }
  0x13   : > { %s1050_s29 = scalar_select %p44_p6, %s949_s20, %s46_s26  }
  0x14   : > { %s1282_s28 = scalar_select %p1044_p7, 1, 0 }
  0x15   : > { %1283 = sst [smem:[#allocation19_spill]] %s1050_s29  ;;  %s1056_s6 = sshll.u32 %s957_s22, 5 }
  0x16   : > { %s1059_s7 = sshll.u32 %s1053_s30, 1  ;;  %p1061_p9 = pnand %p697_p8, %p55_p3 }
  0x17   : > { %s240_s9 = sand.u32 1, %s961_s23   ;;  %s1285_s1 = sld [smem:[#allocation20_spill]] }
  0x18   : > { %s1284_s8 = scalar_select %p1061_p9, 1, 0 }
  0x19   : > { %s244_s13 = scalar_lea.vmem [#allocation8], %s1059_s7  ;;  %s1076_s15 = scalar_lea.sflag [#allocation9], %s240_s9 }
  0x1a   : > { %s252_s14 = sshll.u32 %s244_s13, 4  ;;  %p1082_p12 = pneg %p1061_p9  ;;  %s1073_s14 = int_to_ptr.vmem [resolvable:$true] %s252_s14 }
  0x1d   : > { %s1070_s12 = scalar_lea.hbm %s1285_s1, %s1056_s6  ;;  %s758_s27 = scalar_lea.hbm %s1285_s1, 64 }
  0x1e   : > { %s753_s16 = scalar_lea.hbm %s1070_s12, 32  ;;  %p759_p1 = scmp.lt.u32.totalorder %s1070_s12, %s1285_s1 }
  0x1f   : > { %p754_p11 = scmp.ne.s32.totalorder %s1070_s12, %s753_s16  ;;  %p760_p2 = scmp.lt.u32.totalorder %s758_s27, %s753_s16 }
  0x20   : > { %p762_p4 = scmp.lt.u32.totalorder %s753_s16, %s1070_s12 }
  0x21   : > { %p756_p13 = pnand %p1082_p12, %p754_p11  ;;  %p761_p3 = por %p760_p2, %p759_p1 }
  0x23   : > { %p757_p0 = pneg %p756_p13  ;;  %p763_p5 = por %p762_p4, %p761_p3 }
  0x25   : > { %p764_p6 = pnand %p763_p5, %p757_p0 }
  0x27   : > { %767 = shalt.err (!%p764_p6)
}
  0x28   : > { %s768_s9 = scalar_lea.vmem %s1073_s14, 32  ;;  %s963_s13 = smov [#allocation8]  }
  0x29   : > { %p769_p8 = scmp.ne.s32.totalorder %s1073_s14, %s768_s9  ;;  %s773_s18 = sshll.u32 %s963_s13, 4  ;;  %s774_s18 = int_to_ptr.vmem [resolvable:$false] %s773_s18 }
  0x2a   : > { %s775_s26 = scalar_lea.vmem %s774_s18, 64  ;;  %p776_p10 = scmp.lt.s32.totalorder %s1073_s14, %s774_s18 }
  0x2b   : > { %p771_p11 = pnand %p769_p8, %p1082_p12  ;;  %p777_p7 = scmp.lt.s32.totalorder %s775_s26, %s768_s9 }
  0x2d   : > { %p772_p13 = pneg %p771_p11  ;;  %p778_p1 = por %p777_p7, %p776_p10 }
  0x2f   : > { %p779_p2 = pnand %p778_p1, %p772_p13 }
  0x31   : > { %782 = shalt.err (!%p779_p2)
}
  0x32   : > { %690 = dma.hbm_to_vmem [thread:$0]  (!%p1061_p9), %s1070_s12, 32, %s1073_s14, %s1076_s15  }
  0x33   : > { %p309_p0 = scmp.lt.s32.totalorder %s961_s23, 3  ;;  %p1287_p3 = scmp.ge.s32.totalorder %s961_s23, 1 }
  0x34   : > { %s1117_s11 = scalar_lea.hbm %s1270_s0, %s1056_s6  ;;  %s225_s9 = scalar_lea.vmem [#allocation5], %s1059_s7 }
  0x35   : > { %p1109_p4 = pnand %p1287_p3, %p309_p0  ;;  %s233_s13 = sshll.u32 %s225_s9, 4  ;;  %s234_s13 = int_to_ptr.vmem [resolvable:$true] %s233_s13 }
  0x36   : > { %s222_s18 = scalar_lea.sflag [#allocation6], %s1053_s30  ;;  %s783_s12 = scalar_lea.hbm %s1117_s11, 32 }
  0x37   : > { %s1288_s16 = scalar_select %p1109_p4, 1, 0 }
  0x38   : > { %p784_p7 = scmp.ne.s32.totalorder %s1117_s11, %s783_s12  ;;  %s788_s1 = scalar_lea.hbm %s1270_s0, 64 }
  0x39   : > { %p789_p6 = scmp.lt.u32.totalorder %s1117_s11, %s1270_s0  ;;  %p790_p8 = scmp.lt.u32.totalorder %s788_s1, %s783_s12 }
  0x3a   : > { %p786_p10 = pnand %p784_p7, %p1082_p12  ;;  %p792_p13 = scmp.lt.u32.totalorder %s783_s12, %s1117_s11 }
  0x3b   : > { %p791_p11 = por %p790_p8, %p789_p6 }
  0x3c   : > { %p787_p5 = pneg %p786_p10 }
  0x3d   : > { %p793_p1 = por %p792_p13, %p791_p11 }
  0x3f   : > { %p794_p2 = pnand %p793_p1, %p787_p5 }
  0x41   : > { %797 = shalt.err (!%p794_p2)
}
  0x42   : > { %s798_s9 = scalar_lea.vmem %s234_s13, 32  ;;  %s964_s25 = smov [#allocation5]  }
  0x43   : > { %p799_p0 = scmp.ne.s32.totalorder %s234_s13, %s798_s9  ;;  %s803_s29 = sshll.u32 %s964_s25, 4  ;;  %s804_s29 = int_to_ptr.vmem [resolvable:$false] %s803_s29 }
  0x44   : > { %s805_s14 = scalar_lea.vmem %s804_s29, 64  ;;  %p806_p10 = scmp.lt.s32.totalorder %s234_s13, %s804_s29 }
  0x45   : > { %p801_p3 = pnand %p799_p0, %p1082_p12  ;;  %p807_p4 = scmp.lt.s32.totalorder %s805_s14, %s798_s9 }
  0x47   : > { %p802_p7 = pneg %p801_p3  ;;  %p808_p9 = por %p807_p4, %p806_p10 }
  0x49   : > { %p809_p6 = pnand %p808_p9, %p802_p7 }
  0x4b   : > { %812 = shalt.err (!%p809_p6)
}
  0x4c   : > { %p1289_p8 = scmp.ne.s32.totalorder %s1284_s8, 0  ;;  %s1142_s26 = scalar_lea.hbm %s1272_s2, %s1056_s6 }
  0x4d   : > { %s263_s25 = scalar_lea.vmem [#allocation10], %s1059_s7  ;;  %s813_s27 = scalar_lea.hbm %s1142_s26, 32 }
  0x4e   : > { %687 = dma.hbm_to_vmem [thread:$0]  (!%p1289_p8), %s1117_s11, 32, %s234_s13, %s222_s18  }
  0x4f   : > { %s271_s29 = sshll.u32 %s263_s25, 4  ;;  %p814_p9 = scmp.ne.s32.totalorder %s1142_s26, %s813_s27  ;;  %s272_s29 = int_to_ptr.vmem [resolvable:$true] %s271_s29 }
  0x50   : > { %s818_s11 = scalar_lea.hbm %s1272_s2, 64  ;;  %p819_p11 = scmp.lt.u32.totalorder %s1142_s26, %s1272_s2 }
  0x51   : > { %p816_p4 = pnand %p814_p9, %p1082_p12  ;;  %p820_p13 = scmp.lt.u32.totalorder %s818_s11, %s813_s27 }
  0x52   : > { %p822_p2 = scmp.lt.u32.totalorder %s813_s27, %s1142_s26 }
  0x53   : > { %p817_p5 = pneg %p816_p4  ;;  %p821_p1 = por %p820_p13, %p819_p11 }
  0x55   : > { %p823_p0 = por %p822_p2, %p821_p1 }
  0x57   : > { %p824_p3 = pnand %p823_p0, %p817_p5 }
  0x59   : > { %827 = shalt.err (!%p824_p3)
}
  0x5a   : > { %s828_s6 = scalar_lea.vmem %s272_s29, 32  ;;  %s965_s7 = smov [#allocation10]  }
  0x5b   : > { %p829_p7 = scmp.ne.s32.totalorder %s272_s29, %s828_s6  ;;  %s833_s14 = sshll.u32 %s965_s7, 4  ;;  %s834_s14 = int_to_ptr.vmem [resolvable:$false] %s833_s14 }
  0x5c   : > { %s835_s1 = scalar_lea.vmem %s834_s14, 64  ;;  %p836_p9 = scmp.lt.s32.totalorder %s272_s29, %s834_s14 }
  0x5d   : > { %p831_p10 = pnand %p829_p7, %p1082_p12  ;;  %p837_p4 = scmp.lt.s32.totalorder %s835_s1, %s828_s6 }
  0x5f   : > { %p832_p6 = pneg %p831_p10  ;;  %p838_p8 = por %p837_p4, %p836_p9 }
  0x61   : > { %p839_p11 = pnand %p838_p8, %p832_p6 }
  0x63   : > { %842 = shalt.err (!%p839_p11)
}
  0x64   : > { %p1290_p13 = scmp.ne.s32.totalorder %s1284_s8, 0  ;;  %s664_s12 = smul.u32 6, %s1053_s30 }
  0x65   : > { %s665_s25 = smul.u32 96, %s957_s22  ;;  %s279_s18 = scalar_lea.sflag [#allocation12], %s1053_s30 }
  0x66   : > { %693 = dma.hbm_to_vmem [thread:$0]  (!%p1290_p13), %s1142_s26, 32, %s272_s29, %s1076_s15  }
  0x67   : > { %s1168_s9 = scalar_lea.hbm %s1273_s3, %s665_s25  ;;  %s282_s11 = scalar_lea.vmem [#allocation11], %s664_s12 }
  0x68   : > { %s290_s13 = sshll.u32 %s282_s11, 4  ;;  %s843_s6 = scalar_lea.hbm %s1168_s9, 96  ;;  %s1170_s13 = int_to_ptr.vmem [resolvable:$true] %s290_s13 }
  0x69   : > { %p844_p8 = scmp.ne.s32.totalorder %s1168_s9, %s843_s6  ;;  %s848_s29 = scalar_lea.hbm %s1273_s3, 192 }
  0x6a   : > { %p849_p2 = scmp.lt.u32.totalorder %s1168_s9, %s1273_s3  ;;  %p850_p0 = scmp.lt.u32.totalorder %s848_s29, %s843_s6 }
  0x6b   : > { %p846_p5 = pnand %p844_p8, %p1082_p12  ;;  %p852_p7 = scmp.lt.u32.totalorder %s843_s6, %s1168_s9 }
  0x6c   : > { %p851_p3 = por %p850_p0, %p849_p2 }
  0x6d   : > { %p847_p1 = pneg %p846_p5 }
  0x6e   : > { %p853_p10 = por %p852_p7, %p851_p3 }
  0x70   : > { %p854_p6 = pnand %p853_p10, %p847_p1 }
  0x72   : > { %857 = shalt.err (!%p854_p6)
}
  0x73   : > { %s858_s1 = scalar_lea.vmem %s1170_s13, 96  ;;  %s966_s12 = smov [#allocation11]  }
  0x74   : > { %p859_p9 = scmp.ne.s32.totalorder %s1170_s13, %s858_s1  ;;  %s863_s25 = sshll.u32 %s966_s12, 4  ;;  %s864_s25 = int_to_ptr.vmem [resolvable:$false] %s863_s25 }
  0x75   : > { %s865_s27 = scalar_lea.vmem %s864_s25, 192  ;;  %p866_p8 = scmp.lt.s32.totalorder %s1170_s13, %s864_s25 }
  0x76   : > { %p861_p4 = pnand %p859_p9, %p1082_p12  ;;  %p867_p5 = scmp.lt.s32.totalorder %s865_s27, %s858_s1 }
  0x78   : > { %p862_p11 = pneg %p861_p4  ;;  %p868_p2 = por %p867_p5, %p866_p8 }
  0x7a   : > { %p869_p0 = pnand %p868_p2, %p862_p11 }
  0x7c   : > { %872 = shalt.err (!%p869_p0)
}
  0x7d   : > { %s967_s10 = smov 32   ;;  %s968_s11 = smov 2  }
  0x7e   : > { %696 = dma.hbm_to_vmem [thread:$0]  (!%p1290_p13), %s1168_s9, 96, %s1170_s13, %s279_s18, %s967_s10, %s967_s10, %s968_s11  }
  0x7f   : > { %p1291_p12 = scmp.ne.s32.totalorder %s1288_s16, 0 }
  0x80   : > { %s315_s17 = sand.u32 (!%p1291_p12), 1, %s945_s19   ;;  %p1292_p1 = scmp.ne.s32.totalorder (!%p1291_p12), %s1282_s28, 0 }
  0x81   : > { %313 = sbr.rel (%p1291_p12) target bundleno = 413 (0x19d), region = 40  ;;  %s1199_s6 = sshll.u32 (!%p1291_p12), %s315_s17, 1 }
  0x82   : > { %s316_s15 = scalar_lea.sflag (!%p1291_p12), [#allocation6], %s315_s17  ;;  %s319_s26 = scalar_lea.vmem (!%p1291_p12), [#allocation5], %s1199_s6 }
  0x88   : > { %924 = dma.done.wait (%p1292_p1), %s316_s15, 32  }
  0x89   : > { %926 = vsyncadd (%p1292_p1), %s316_s15, 4294967264  ;;  %s324_s30 = sand.u32 1, %s1031_s24   ;;  %s328_s16 = scalar_lea.vmem [#allocation8], %s1199_s6 }
  0x8a   : > { %s325_s8 = scalar_lea.sflag [#allocation9], %s324_s30 }
  0x8b   : > { %928 = dma.done.wait (%p1292_p1), %s325_s8, 64  }
  0x8c   : > { %930 = vsyncadd (%p1292_p1), %s325_s8, 4294967232  ;;  %s666_s9 = smul.u32 6, %s315_s17  ;;  %s337_s13 = scalar_lea.vmem [#allocation10], %s1199_s6 }
  0x8d   : > { %s343_s18 = scalar_lea.sflag [#allocation12], %s315_s17 }
  0x8e   : > { %s1213_s29 = scalar_lea.vmem [#allocation11], %s666_s9 }
  0x8f   : > { %932 = dma.done.wait (%p1292_p1), %s343_s18, 96  }
  0x90   : > { %934 = vsyncadd (%p1292_p1), %s343_s18, 4294967200  ;;  %p391_p13 = scmp.lt.s32.totalorder %s953_s21, 1  ;;  %p653_p3 = scmp.ne.s32.totalorder %s953_s21, 0 }
  0x91   : > { %v969_v0 = vmov (!%p653_p3), 0.0  }
  0x92   : > { %s392_s7 = scalar_select %p391_p13, %s953_s21, 1 }
  0x93   : > { %402 = sbr.rel (%p653_p3) target bundleno = 154 (0x9a), region = 60  ;;  %403 = vst [vmem:[#allocation2] sm:$0x3] (!%p653_p3), %v969_v0  ;;  %404 = vst [vmem:[#allocation3] sm:$0x3] (!%p653_p3), %v969_v0 }
  0x94   : > { %s667_s14 = smul.u32 6, %s392_s7  ;;  %405 = vst [vmem:[#allocation4] sm:$0x3] (!%p653_p3), %v969_v0 }
  0x96   : > { %s398_s25 = scalar_lea.vmem %s1274_s4, %s667_s14 }
  0x9a PF: > { %v406_v1 = vld [vmem:[%s319_s26] sm:$0x3]  ;;  %v407_v2 = vld [vmem:[%s328_s16] sm:$0x3]  ;;  %v432_v3 = vld [vmem:[#allocation2] sm:$0x3] }
  0x9b   : > { %v408_v4 = vsub.f32 %v407_v2, %v406_v1  ;;  %v410_v5 = vld [vmem:[%s337_s13] sm:$0x3]  ;;  %v435_v6 = vld [vmem:[#allocation3] sm:$0x3]  ;;  %v414_v7 = vld [vmem:[%s1213_s29] sm:$0x3] }
  0x9c   : > { %vm411_vm0 = vcmp.eq.f32.partialorder %v410_v5, 0.5019608  ;;  %v415_v8 = vld [vmem:[%s398_s25] sm:$0x3]  ;;  %v970_v10 = vmov 0.0   ;;  %p659_p7 = scmp.ne.s32.totalorder %s953_s21, 1 }
  0x9d   : > { %v409_v9 = vmul.f32 %v408_v4, %v408_v4  ;;  %v654_v11 = vsel %vm411_vm0, 1.0, %v970_v10  ;;  %v416_v12 = vsub.f32 %v414_v7, %v415_v8  ;;  %v655_v13 = vld [vmem:[%s1213_s29 + $0x2] sm:$0x3]  ;;  %v656_v14 = vld [vmem:[%s398_s25 + $0x2] sm:$0x3]  ;;  %vm450_vm1 = vcmask (!%p659_p7), 1041408  }
  0x9e   : > { %v436_v15 = vadd.f32 %v654_v11, %v435_v6  ;;  %v422_v16 = vsub.f32 %v655_v13, %v656_v14  ;;  %v657_v17 = vld [vmem:[%s1213_s29 + $0x4] sm:$0x3]  ;;  %v658_v18 = vld [vmem:[%s398_s25 + $0x4] sm:$0x3]  ;;  %v438_v27 = vld [vmem:[#allocation4] sm:$0x3]  ;;  %v472_v50 = vlaneseq (!%p659_p7) }
  0x9f   : > { %v433_v19 = vadd.f32 %v432_v3, %v409_v9  ;;  %v417_v20 = vmul.f32 %v416_v12, %v416_v12  ;;  %v429_v21 = vsub.f32 %v657_v17, %v658_v18 }
  0xa0   : > { %437 = vst [vmem:[#allocation3] sm:$0x3] %v436_v15  ;;  %v423_v22 = vmul.f32 %v422_v16, %v422_v16  ;;  %v473_v51 = vshrl.u32 (!%p659_p7), %v472_v50, 7 }
  0xa1   : > { %434 = vst [vmem:[#allocation2] sm:$0x3] %v433_v19  ;;  %v430_v23 = vmul.f32 %v429_v21, %v429_v21 }
  0xa2   : > { %v424_v24 = vadd.f32 %v423_v22, %v417_v20  ;;  %vm474_vm2 = vcmp.eq.s32.totalorder (!%p659_p7), %v473_v51, 0 }
  0xa4   : > { %v431_v25 = vadd.f32 %v430_v23, %v424_v24 }
  0xa6   : > { %v439_v26 = vmul.f32 %v431_v25, %v409_v9  ;;  %446 = sbr.rel (%p659_p7) target bundleno = 388 (0x184), region = 64 }
  0xa7   : > { %v448_v31 = vld [vmem:[#allocation3] sm:$0x3] (!%p659_p7) }
  0xa8   : > { %v440_v28 = vmul.f32 %v654_v11, %v439_v26  ;;  %v447_v30 = vld [vmem:[#allocation2] sm:$0x3] (!%p659_p7) }
  0xa9   : > { %v449_v32 = vmul.f32 (!%p659_p7), %v448_v31, %v447_v30 }
  0xaa   : > { %v441_v29 = vadd.f32 %v440_v28, %v438_v27 }
  0xab   : > { %v451_v34 = vsel (!%p659_p7), %vm450_vm1, %v449_v32, 0.0 }
  0xac   : > { %442 = vst [vmem:[#allocation4] sm:$0x3] %v441_v29  ;;  %452 = vadd.xlane.f32.xlu0 (!%p659_p7), %v451_v34 }
  0xb3   : > { %v461_v33 = vld [vmem:[#allocation4] sm:$0x3] }
  0xb4   : > { %v462_v35 = vsel %vm450_vm1, %v461_v33, 0.0 }
  0xb5   : > { %463 = vadd.xlane.f32.xlu0 %v462_v35 }
 0x139   : > { %v453_v36 = vpop.xlane.xlu0 %452 }
 0x13a   : > { %v454_v37 = vrot.slane %v453_v36, 4 }
 0x13c   : > { %v455_v38 = vadd.f32 %v454_v37, %v453_v36 }
 0x13e   : > { %v456_v40 = vrot.slane %v455_v38, 2 }
 0x140   : > { %v457_v43 = vadd.f32 %v456_v40, %v455_v38 }
 0x142   : > { %v464_v39 = vpop.xlane.xlu0 %463  ;;  %v458_v45 = vrot.slane %v457_v43, 1 }
 0x143   : > { %v465_v41 = vrot.slane %v464_v39, 4 }
 0x144   : > { %v459_v47 = vadd.f32 %v458_v45, %v457_v43 }
 0x145   : > { %v466_v42 = vadd.f32 %v465_v41, %v464_v39 }
 0x146   : > { %668 = vpush %v459_v47 }
 0x147   : > { %v467_v44 = vrot.slane %v466_v42, 2 }
 0x149   : > { %v468_v46 = vadd.f32 %v467_v44, %v466_v42 }
 0x14b   : > { %v469_v48 = vrot.slane %v468_v46, 1 }
 0x14d   : > { %v470_v49 = vadd.f32 %v469_v48, %v468_v46 }
 0x14f   : > { %670 = vpush %v470_v49 }
 0x177   : > { %s669_s21 = spop %668 }
 0x178   : > { %v475_v52 = vstv %s669_s21 }
 0x180   : > { %s671_s28 = spop %670 }
 0x181   : > { %v476_v53 = vstv %s671_s28 }
 0x182   : > { %v477_v54 = vsel %vm474_vm2, %v475_v52, %v476_v53 }
 0x183   : > { %478 = vst [vmem:[#allocation13] sm:$0x3] %v477_v54 }
 0x184 PF: > { %p698_p10 = scmp.eq.s32.totalorder %s1031_s24, 1  ;;  %s971_s27 = smov [#allocation13]  }
 0x185   : > { %s488_s10 = sshll.u32 %s971_s27, 4  ;;  %s489_s10 = int_to_ptr.vmem [resolvable:$true] %s488_s10 }
 0x186   : > { %s873_s11 = scalar_lea.vmem %s489_s10, 32  ;;  %p880_p11 = scmp.lt.s32.totalorder %s489_s10, %s489_s10 }
 0x187   : > { %p874_p6 = scmp.ne.s32.totalorder %s489_s10, %s873_s11  ;;  %p881_p8 = scmp.lt.s32.totalorder %s873_s11, %s873_s11 }
 0x189   : > { %p875_p9 = pnand %p874_p6, %p698_p10  ;;  %p882_p5 = por %p881_p8, %p880_p11 }
 0x18b   : > { %p876_p4 = pneg %p875_p9 }
 0x18d   : > { %p883_p2 = pnand %p882_p5, %p876_p4 }
 0x18f   : > { %886 = shalt.err (!%p883_p2)
}
 0x190   : > { %s887_s15 = scalar_lea.hbm %s1275_s5, 32 }
 0x191   : > { %p888_p0 = scmp.ne.s32.totalorder %s1275_s5, %s887_s15  ;;  %p893_p13 = scmp.lt.u32.totalorder %s887_s15, %s1275_s5 }
 0x193   : > { %p889_p12 = pnand %p888_p0, %p698_p10 }
 0x195   : > { %p890_p1 = pneg %p889_p12 }
 0x197   : > { %p895_p3 = pnand %p893_p13, %p890_p1 }
 0x199   : > { %898 = shalt.err (!%p895_p3)
}
 0x19a   : > { %681 = dma.vmem_to_hbm [thread:$0]  (%p698_p10), %s489_s10, 32, %s1275_s5, [#allocation7]  }
 0x19b   : > { %936 = dma.done.wait (%p698_p10), [#allocation7], 32  }
 0x19c   : > { %938 = vsyncadd (%p698_p10), [#allocation7], 4294967264 }
 0x19d PF: > { %s25_s23 = sadd.s32 1, %s961_s23   ;;  %s1293_s29 = sld [smem:[#allocation19_spill]] }
 0x19e   : > { %p22_p7 = scmp.ge.s32.totalorder %s25_s23, 4   ;;  %s1294_s7 = sld [smem:[#allocation18_spill]] }
 0x19f   : > { %s1295_s18 = smov %s945_s19  ;;  %s1296_s19 = smov %s949_s20 }
 0x1a0   : > { %s1298_s21 = smov %s957_s22  ;;  %24 = sbr.rel (!%p22_p7) target bundleno = 11 (0xb), region = 130 }
 0x1a3   : > { %s1297_s20 = smov %s1293_s29 }
 0x1a4   : > { %s1299_s22 = smov %s1294_s7 }
 0x1a7   :  { %501 = vsyncpa [#allocation6], 1 }
 0x1a8   :  { %503 = vsyncpa [#allocation6 + $0x1], 1 }
 0x1a9   :  { %504 = vsyncpa [#allocation9], 1 }
 0x1aa   :  { %506 = vsyncpa [#allocation9 + $0x1], 1 }
 0x1ab   :  { %507 = vsyncpa [#allocation12], 1 }
 0x1ac   :  { %509 = vsyncpa [#allocation12 + $0x1], 1 }
 0x1ad   :  { %510 = vsyncpa [#allocation7], 1 }
 0x1ae   :  { %512 = vsyncpa [#allocation7 + $0x1], 1 }

</bundles_post_ra>
